<compile_context>
chip_gen: v5e
topology: v5e:2x2
jax: 0.10.0
libtpu: 0.0.40
codegen_flags: <defaults>
</compile_context>

<pallas_src>
import functools

import jax
import jax.numpy as jnp
from jax.experimental import pallas as pl
from jax.experimental.pallas import tpu as pltpu

_LANES = 128                      # vreg lane width
_SUBLANES = 8                     # vreg sublane height
_ACC_ROWS = 32                    # resident accumulator rows (VALU ILP on v7x)
_SMALL_MAX_ELEMS = 512 * _LANES   # <= one (512,128) block -> gridless fast path


def _num_tensorcores():
    """TensorCores one pallas_call can shard across (2 on v7x, else 1)."""
    try:
        kind = jax.devices()[0].device_kind.lower()
    except Exception:
        return 1
    return 2 if ("v7" in kind or "7x" in kind) else 1


def _loss_terms(pred_vals, label_vals):
    """Per-element loss term WITHOUT the 1e4 scale (deferred to the epilogue).

    Reference: where(d < -0.5, (1+d)*1e4, where(d > 0.5, d*1e4, 0)).
    """
    d = pred_vals.astype(jnp.float32) - label_vals.astype(jnp.float32)
    return jnp.where(d < -0.5, d + 1.0, jnp.where(d > 0.5, d, 0.0))


def _othello_loss_small_kernel(pred_ref, label_ref, out_ref):
    # Whole array in one VMEM block; scalar total to SMEM.
    out_ref[0, 0] = jnp.sum(_loss_terms(pred_ref[...], label_ref[...]))


def _othello_loss_tiled_kernel(pred_ref, label_ref, out_ref, *,
                               tile_rows, acc_rows, tiles_per_partial,
                               rows_total):
    p = pl.program_id(0)
    k = pl.program_id(1)

    @pl.when(k == 0)
    def _():
        out_ref[...] = jnp.zeros_like(out_ref)

    t = _loss_terms(pred_ref[...], label_ref[...])
    row0 = (p * tiles_per_partial + k) * tile_rows  # first row this block claims

    def accumulate(vals):
        # Fold the tile into the resident (acc_rows, 128) accumulator: pure
        # VPU adds; the single cross-lane reduce happens once in the wrapper.
        out_ref[...] += jnp.sum(
            vals.reshape(tile_rows // acc_rows, acc_rows, _LANES), axis=0)

    # Common case: fully in-bounds tile — no mask on the streaming VALU path.
    @pl.when(row0 + tile_rows <= rows_total)
    def _():
        accumulate(t)

    # Edge / fully out-of-range tile: Pallas edge-block padding (and the
    # clamped index_map for fully-OOB grid steps) supplies garbage rows; zero
    # them with a row-id mask so they contribute exactly 0.
    @pl.when(row0 + tile_rows > rows_total)
    def _():
        valid = rows_total - row0          # may be <= 0 for fully-OOB steps
        row_ids = jax.lax.broadcasted_iota(jnp.int32, (tile_rows, _LANES), 0)
        accumulate(jnp.where(row_ids < valid, t, 0.0))


def othello_loss(pred, label, th=None, *, tile_rows=4096, num_partials=None):
    """Pallas TPU implementation of OthelloLoss.forward(pred, label, th)."""
    del th  # accepted but unused, exactly as in the reference module
    assert pred.shape == label.shape and pred.ndim == 2
    n_batch, _ = pred.shape
    total = pred.shape[0] * pred.shape[1]

    # ---------- tiny-input fast path: one gridless block ----------
    if total <= _SMALL_MAX_ELEMS:
        tsum = pl.pallas_call(
            _othello_loss_small_kernel,
            out_shape=jax.ShapeDtypeStruct((1, 1), jnp.float32),
            out_specs=pl.BlockSpec(memory_space=pltpu.MemorySpace.SMEM),
        )(pred, label)
        return tsum[0, 0] * 10000.0 / jnp.float32(n_batch)

    # ---------- streaming tiled path on a lane-dense (rows, 128) view ----------
    rem = total % _LANES
    if rem == 0:
        pred2d = pred.reshape(-1, _LANES)
        label2d = label.reshape(-1, _LANES)
    else:
        # TODO(synk): rare ragged case (e.g. odd batch with 64 channels); the
        # minimal 128-alignment pad still costs one HBM copy of each input.
        pad = _LANES - rem
        pred2d = jnp.pad(pred.reshape(-1), (0, pad)).reshape(-1, _LANES)
        label2d = jnp.pad(label.reshape(-1), (0, pad)).reshape(-1, _LANES)
    rows = pred2d.shape[0]

    # Tile geometry: multiple of 8 sublanes, never larger than the row count.
    tile_rows = max(_SUBLANES,
                    (min(int(tile_rows), rows) // _SUBLANES) * _SUBLANES)
    acc_rows = next(a for a in (_ACC_ROWS, 16, _SUBLANES) if tile_rows % a == 0)
    num_tiles = pl.cdiv(rows, tile_rows)

    if num_partials is None:
        num_partials = _num_tensorcores()
    num_partials = max(1, min(int(num_partials), num_tiles))
    tiles_per_partial = pl.cdiv(num_tiles, num_partials)

    def in_index_map(p, k):
        # Clamp so the (at most one) fully-out-of-range grid step re-reads the
        # last real tile instead of DMA-ing past the array; its contribution
        # is masked to zero inside the kernel.
        return (jnp.minimum(p * tiles_per_partial + k, num_tiles - 1), 0)

    kernel = functools.partial(
        _othello_loss_tiled_kernel,
        tile_rows=tile_rows, acc_rows=acc_rows,
        tiles_per_partial=tiles_per_partial, rows_total=rows)

    # On v7x the partial axis is split across the two TensorCores; on
    # single-TC chips (v5e/v6e) num_partials == 1 and the axis is trivial.
    partial_sem = pltpu.CORE_PARALLEL if num_partials > 1 else pltpu.ARBITRARY

    partials = pl.pallas_call(
        kernel,
        out_shape=jax.ShapeDtypeStruct((num_partials * acc_rows, _LANES),
                                       jnp.float32),
        grid_spec=pltpu.PrefetchScalarGridSpec(
            num_scalar_prefetch=0,
            grid=(num_partials, tiles_per_partial),
            in_specs=[
                pl.BlockSpec((tile_rows, _LANES), in_index_map),
                pl.BlockSpec((tile_rows, _LANES), in_index_map),
            ],
            out_specs=pl.BlockSpec((acc_rows, _LANES), lambda p, k: (p, 0)),
        ),
        compiler_params=pltpu.CompilerParams(
            dimension_semantics=(partial_sem, pltpu.ARBITRARY)),
    )(pred2d, label2d)

    # Tiny epilogue: single cross-lane reduce, deferred 1e4 scale, batch mean
    # with the ORIGINAL batch size as divisor (zero padding contributes 0).
    return jnp.sum(partials) * 10000.0 / jnp.float32(n_batch)


def _reference_loss(pred, label):
    pred = pred.astype(jnp.float32)
    label = label.astype(jnp.float32)
    sub_tmp = pred - label
    sub_miss = jnp.where(sub_tmp < -0.5, sub_tmp, 0.0)
    sub_wrong = jnp.where(sub_tmp > 0.5, sub_tmp, 0.0)
    smw = sub_miss + sub_wrong
    res = jnp.where(smw < 0.0, (1.0 + smw) * 10000.0, smw * 10000.0)
    return jnp.mean(jnp.sum(res, axis=1))


if __name__ == "__main__":
    key = jax.random.PRNGKey(0)
    k1, k2, k3, k4 = jax.random.split(key, 4)

    th = jnp.float32(0.5)  # accepted but unused, as in the reference module

    # Case 1: the literal Othello shape (8 games x 64 squares) -> fast path.
    pred_s = jax.random.uniform(k1, (8, 64), dtype=jnp.float32)
    label_s = (jax.random.uniform(k2, (8, 64)) > 0.5).astype(jnp.float32)
    out_s = jax.block_until_ready(othello_loss(pred_s, label_s, th))
    ref_s = _reference_loss(pred_s, label_s)
    assert jnp.allclose(out_s, ref_s, rtol=1e-4, atol=1e-2), (out_s, ref_s)

    # Case 2: larger batch -> tiled streaming path with a masked ragged tail
    # (1030*64/128 = 515 rows -> two 512-row tiles, 3 valid rows in the last).
    pred_b = jax.random.uniform(k3, (1030, 64), dtype=jnp.float32)
    label_b = (jax.random.uniform(k4, (1030, 64)) > 0.5).astype(jnp.float32)
    out_b = jax.block_until_ready(othello_loss(pred_b, label_b, th))
    ref_b = _reference_loss(pred_b, label_b)
    assert jnp.allclose(out_b, ref_b, rtol=1e-4, atol=1e-2), (out_b, ref_b)

    # Case 3: narrow (bf16) inputs - the kernel casts in-register, no upstream
    # upcast, so HBM traffic is halved for callers that can supply bf16.
    pred_h = pred_b.astype(jnp.bfloat16)
    label_h = label_b.astype(jnp.bfloat16)
    out_h = jax.block_until_ready(othello_loss(pred_h, label_h, th))
    ref_h = _reference_loss(pred_h, label_h)
    assert jnp.allclose(out_h, ref_h, rtol=1e-3, atol=1.0), (out_h, ref_h)

    print("KERNEL_OK")
</pallas_src>

<mosaic_0001>
module attributes {stable_mosaic.version = 11 : i64} {
  func.func @_othello_loss_small_kernel(%arg0: memref<8x64xf32, #tpu.memory_space<vmem>>, %arg1: memref<8x64xf32, #tpu.memory_space<vmem>>, %arg2: memref<1x1xf32, #tpu.memory_space<smem>>) attributes {dimension_semantics = [], scalar_prefetch = 0 : i64, scratch_operands = 0 : i64, tpu.core_type = #tpu.core_type<tc>} {
    %c0 = arith.constant 0 : index
    %c0_0 = arith.constant 0 : index
    %0 = vector.load %arg0[%c0, %c0_0] : memref<8x64xf32, #tpu.memory_space<vmem>>, vector<8x64xf32>
    %c0_1 = arith.constant 0 : index
    %c0_2 = arith.constant 0 : index
    %1 = vector.load %arg1[%c0_1, %c0_2] : memref<8x64xf32, #tpu.memory_space<vmem>>, vector<8x64xf32>
    %2 = arith.subf %0, %1 : vector<8x64xf32>
    %cst = arith.constant -5.000000e-01 : f32
    %3 = vector.broadcast %cst : f32 to vector<8x64xf32>
    %4 = arith.cmpf olt, %2, %3 : vector<8x64xf32>
    %cst_3 = arith.constant 1.000000e+00 : f32
    %5 = vector.broadcast %cst_3 : f32 to vector<8x64xf32>
    %6 = arith.addf %2, %5 : vector<8x64xf32>
    %cst_4 = arith.constant 5.000000e-01 : f32
    %7 = vector.broadcast %cst_4 : f32 to vector<8x64xf32>
    %8 = arith.cmpf ogt, %2, %7 : vector<8x64xf32>
    %cst_5 = arith.constant 0.000000e+00 : f32
    %9 = vector.broadcast %cst_5 : f32 to vector<8x64xf32>
    %10 = arith.select %8, %2, %9 : vector<8x64xi1>, vector<8x64xf32>
    %11 = arith.select %4, %6, %10 : vector<8x64xi1>, vector<8x64xf32>
    %12 = vector.shape_cast %11 : vector<8x64xf32> to vector<1x8x64xf32>
    %cst_6 = arith.constant dense<0.000000e+00> : vector<1xf32>
    %13 = vector.multi_reduction <add>, %12, %cst_6 [1, 2] : vector<1x8x64xf32> to vector<1xf32>
    %14 = vector.shape_cast %13 : vector<1xf32> to vector<1x1x1xf32>
    %15 = vector.extract %14[0, 0, 0] : f32 from vector<1x1x1xf32>
    %c0_7 = arith.constant 0 : index
    %c0_8 = arith.constant 0 : index
    %16 = memref.load %arg2[%c0_7, %c0_8] : memref<1x1xf32, #tpu.memory_space<smem>>
    memref.store %15, %arg2[%c0_7, %c0_8] : memref<1x1xf32, #tpu.memory_space<smem>>
    return
  }
}

</mosaic_0001>

<bundles_post_ra>
// kernel: tpu_custom_call.1
= control target key start
LH: loop header
LB: loop body
LE: loop exit
PB: predicated region body
PF: predicated region fallthrough
CT: control target
= control target key end

     0   :  { %7 = vsyncpa [#allocation3], 0  ;;  %s176_s0 = inlined_call_operand.hbm [shape: f32[8,64], index: 0, kind: input, shape index: {}]   ;;  %s177_s1 = inlined_call_operand.hbm [shape: f32[8,64], index: 1, kind: input, shape index: {}]   ;;  %s178_s2 = inlined_call_operand.hbm [shape: f32[1,1], index: 2, kind: output, shape index: {}]  }
   0x1   :  { %8 = vsyncpa [#allocation6], 0 }
   0x2   :  { %9 = vsyncpa [#allocation4], 0  ;;  %s15_s11 = sshll.u32 %s176_s0, 4  ;;  %s149_s12 = smov [#allocation2]   ;;  %s16_s11 = int_to_ptr.hbm [resolvable:$true] %s15_s11 }
   0x3   :  { %s17_s13 = sshll.u32 %s149_s12, 4  ;;  %s26_s16 = sshll.u32 %s177_s1, 4  ;;  %s18_s13 = int_to_ptr.vmem [resolvable:$true] %s17_s13  ;;  %s27_s16 = int_to_ptr.hbm [resolvable:$true] %s26_s16 }
   0x4   :  { %20 = dma.hbm_to_vmem [thread:$0]  %s16_s11, 128, %s18_s13, [#allocation3]  }
   0x5   :  { %s150_s17 = smov [#allocation5]  }
   0x6   :  { %s28_s18 = sshll.u32 %s150_s17, 4  ;;  %s29_s18 = int_to_ptr.vmem [resolvable:$true] %s28_s18 }
   0x7   :  { %31 = dma.hbm_to_vmem [thread:$0]  %s27_s16, 128, %s29_s18, [#allocation6]  }
   0x8   :  { %143 = dma.done.wait [#allocation3], 128  }
   0x9   :  { %144 = vsyncadd [#allocation3], 4294967168 }
   0xa   :  { %145 = dma.done.wait [#allocation6], 128  }
   0xb   :  { %146 = vsyncadd [#allocation6], 4294967168  ;;  %v40_v0 = vld [vmem:[#allocation2] sm:$0xff]  ;;  %v41_v1 = vld [vmem:[#allocation5] sm:$0xff]  ;;  %vm48_vm2 = vcmask 523264   ;;  %s66_s19 = sshll.u32 %s178_s2, 4  ;;  %s67_s19 = int_to_ptr.hbm [resolvable:$true] %s66_s19 }
   0xc   :  { %v42_v2 = vsub.f32 %v40_v0, %v41_v1  ;;  %s151_s21 = smov [#allocation7]  }
   0xe   :  { %vm43_vm0 = vcmp.lt.f32.partialorder %v42_v2, -0.5  ;;  %v44_v3 = vadd.f32 1.0, %v42_v2  ;;  %vm45_vm1 = vcmp.gt.f32.partialorder %v42_v2, 0.5 }
   0xf   :  { %v46_v4 = vsel %vm45_vm1, %v42_v2, 0.0 }
  0x10   :  { %v47_v5 = vsel %vm43_vm0, %v44_v3, %v46_v4 }
  0x11   :  { %v49_v6 = vsel %vm48_vm2, %v47_v5, 0.0 }
  0x12   :  { %50 = vadd.xlane.f32.xlu0 %v49_v6 }
  0x85   :  { %v51_v7 = vpop.xlane.xlu0 %50 }
  0x86   :  { %v52_v8 = vrot.slane %v51_v7, 4 }
  0x88   :  { %v53_v9 = vadd.f32 %v52_v8, %v51_v7 }
  0x8a   :  { %v54_v10 = vrot.slane %v53_v9, 2 }
  0x8c   :  { %v55_v11 = vadd.f32 %v54_v10, %v53_v9 }
  0x8e   :  { %v56_v12 = vrot.slane %v55_v11, 1 }
  0x90   :  { %v57_v13 = vadd.f32 %v56_v12, %v55_v11 }
  0x92   :  { %78 = vpush %v57_v13 }
  0xc3   :  { %s79_s20 = spop %78 }
  0xc4   :  { %60 = sst [smem:[#allocation7]] %s79_s20 }
  0xc5   :  { %69 = dma.smem_to_hbm %s151_s21, 16, %s67_s19, [#allocation4]  }
  0xc6   :  { %147 = dma.done.wait [#allocation4], 16  }
  0xc7   :  { %148 = vsyncadd [#allocation4], 4294967280 }
  0xc8   :  { %74 = sfence }
  0xc9   :  { %75 = vsyncpa [#allocation3], 1 }
  0xca   :  { %76 = vsyncpa [#allocation6], 1 }
  0xcb   :  { %77 = vsyncpa [#allocation4], 1 }

</bundles_post_ra>
